<compile_context>
chip_gen: v5e
topology: v5e:2x2
jax: 0.10.0
libtpu: 0.0.40
codegen_flags: <defaults>
</compile_context>

<pallas_src>
import functools
import math

import jax
import jax.numpy as jnp
from jax.experimental import pallas as pl
from jax.experimental.pallas import tpu as pltpu


# ----------------------------------------------------------------------------
# Kernels
# ----------------------------------------------------------------------------
def _fused_kernel(x_ref, w_ref, adj_ref, out_ref):
    # support = x @ W (bf16 operands, f32 MXU accumulation), rounded to bf16.
    support = jnp.dot(
        x_ref[...].astype(jnp.bfloat16),
        w_ref[...].astype(jnp.bfloat16),
        preferred_element_type=jnp.float32,
    ).astype(jnp.bfloat16)
    # out rows = adj row-slab @ support  (support never leaves VMEM/vregs).
    out_ref[...] = jnp.dot(
        adj_ref[...].astype(jnp.bfloat16),
        support,
        preferred_element_type=jnp.float32,
    ).astype(out_ref.dtype)


def _support_kernel(x_ref, w_ref, s_ref):
    s_ref[...] = jnp.dot(
        x_ref[...].astype(jnp.bfloat16),
        w_ref[...].astype(jnp.bfloat16),
        preferred_element_type=jnp.float32,
    ).astype(s_ref.dtype)


def _aggregate_kernel(adj_ref, s_ref, out_ref, acc_ref, *, tk, resident):
    # out tile = sum_k adj[i, k] @ support[k]  with f32 VMEM accumulator.
    k = pl.program_id(1)

    @pl.when(k == 0)
    def _():
        acc_ref[...] = jnp.zeros_like(acc_ref)

    if resident:
        # The whole support matrix is VMEM-resident (fetched once); slice the
        # current K block in-kernel instead of re-DMAing it per row tile.
        k0 = pl.multiple_of(k * tk, tk)
        s_blk = s_ref[pl.ds(k0, tk), :]
    else:
        s_blk = s_ref[...]

    acc_ref[...] += jnp.dot(
        adj_ref[...].astype(jnp.bfloat16),   # in-kernel cast: f32 adj stays in HBM
        s_blk,
        preferred_element_type=jnp.float32,
    )

    @pl.when(k == pl.num_programs(1) - 1)
    def _():
        out_ref[...] = acc_ref[...].astype(out_ref.dtype)


# ----------------------------------------------------------------------------
# Helpers
# ----------------------------------------------------------------------------
def _round_up(v, m):
    return ((v + m - 1) // m) * m


def _pick_tile(total, desired, quantum):
    """Largest multiple of `quantum` that divides `total` and is <= desired."""
    desired = max(desired, quantum)
    best = quantum
    t = quantum
    while t <= min(desired, total):
        if total % t == 0:
            best = t
        t += quantum
    return best


def _vmem_budget_bytes():
    try:
        cap = pltpu.get_tpu_info().vmem_capacity_bytes
    except Exception:
        cap = 64 * 1024 * 1024          # conservative fallback (v7x physical)
    # Leave headroom for Mosaic internals / double-buffering slack.
    return min(int(cap * 0.7), 64 * 1024 * 1024)


# ----------------------------------------------------------------------------
# Wrapper
# ----------------------------------------------------------------------------
def gcn_forward(x, weight, adj, *, tm=None, tk=None, support_resident=None):
    """Pallas implementation of GraphConvolutionLayer.forward.

    x      : [N, F_in]
    weight : [F_in, F_out]
    adj    : [N, N]
    returns: [N, F_out] in x.dtype
    """
    n, f_in = x.shape
    f_in_w, f_out = weight.shape
    assert f_in == f_in_w
    assert adj.shape == (n, n)
    out_dtype = x.dtype
    itemsize = jnp.dtype(out_dtype).itemsize

    # ---- zero-pad every dim to a multiple of 128 (lane-dense + general N) ---
    n_pad = _round_up(n, 128)
    f_in_pad = _round_up(f_in, 128)
    f_out_pad = _round_up(f_out, 128)
    if (n_pad, f_in_pad) != (n, f_in):
        x = jnp.pad(x, ((0, n_pad - n), (0, f_in_pad - f_in)))
    if (f_in_pad, f_out_pad) != (f_in, f_out):
        weight = jnp.pad(weight, ((0, f_in_pad - f_in), (0, f_out_pad - f_out)))
    if n_pad != n:
        adj = jnp.pad(adj, ((0, n_pad - n), (0, n_pad - n)))

    vmem_budget = _vmem_budget_bytes()

    # ------------------------------------------------------------------
    # Fused path (small problems): one pallas_call, support stays on-chip.
    # ------------------------------------------------------------------
    tmf = n_pad // 2                      # 2 row tiles -> both v7x TCs busy
    fused_vmem = (
        2 * n_pad * f_in_pad * 4          # x (full block, double-buffered)
        + 2 * f_in_pad * f_out_pad * 4    # W (full block)
        + 2 * tmf * n_pad * 4             # adj row slab
        + 2 * tmf * f_out_pad * 4         # out row slab
        + 2 * n_pad * f_out_pad * 4       # support intermediate headroom
    )
    if n_pad <= 512 and fused_vmem <= vmem_budget:
        out = pl.pallas_call(
            _fused_kernel,
            out_shape=jax.ShapeDtypeStruct((n_pad, f_out_pad), out_dtype),
            grid=(n_pad // tmf,),
            in_specs=[
                pl.BlockSpec((n_pad, f_in_pad), lambda i: (0, 0)),      # all of x
                pl.BlockSpec((f_in_pad, f_out_pad), lambda i: (0, 0)),  # all of W
                pl.BlockSpec((tmf, n_pad), lambda i: (i, 0)),           # adj rows
            ],
            out_specs=pl.BlockSpec((tmf, f_out_pad), lambda i: (i, 0)),
            compiler_params=pltpu.CompilerParams(
                dimension_semantics=("parallel",),
                vmem_limit_bytes=vmem_budget,
            ),
            cost_estimate=pl.CostEstimate(
                flops=2 * n_pad * f_in_pad * f_out_pad * (n_pad // tmf)
                + 2 * n_pad * n_pad * f_out_pad,
                transcendentals=0,
                bytes_accessed=(n_pad * f_in_pad + f_in_pad * f_out_pad
                                + n_pad * n_pad) * 4
                + n_pad * f_out_pad * itemsize,
            ),
        )(x, weight, adj)
        return out[:n, :f_out]

    # ------------------------------------------------------------------
    # Two-pass path.
    # ------------------------------------------------------------------
    # ---- pass 1: support = x @ W  (rows x out-cols, both parallel) --------
    tms = _pick_tile(n_pad, min(256, n_pad // 2), 128)
    tn_cap = max(128, (vmem_budget // 8) // max(1, 2 * f_in_pad * 4))
    tn = _pick_tile(f_out_pad, min(512, tn_cap), 128)
    support = pl.pallas_call(
        _support_kernel,
        out_shape=jax.ShapeDtypeStruct((n_pad, f_out_pad), jnp.bfloat16),
        grid=(n_pad // tms, f_out_pad // tn),
        in_specs=[
            pl.BlockSpec((tms, f_in_pad), lambda i, j: (i, 0)),   # x rows (f32)
            pl.BlockSpec((f_in_pad, tn), lambda i, j: (0, j)),    # W cols (f32)
        ],
        out_specs=pl.BlockSpec((tms, tn), lambda i, j: (i, j)),
        compiler_params=pltpu.CompilerParams(
            dimension_semantics=("parallel", "parallel"),
            vmem_limit_bytes=vmem_budget,
        ),
        cost_estimate=pl.CostEstimate(
            flops=2 * n_pad * f_in_pad * f_out_pad,
            transcendentals=0,
            bytes_accessed=n_pad * f_in_pad * 4
            + (n_pad // tms) * f_in_pad * f_out_pad * 4
            + n_pad * f_out_pad * 2,
        ),
    )(x, weight)

    # ---- pass 2: out = adj @ support  (rows parallel, K reduction last) ----
    if tm is None:
        tm = 512
    if tk is None:
        tk = 1024
    tm = _pick_tile(n_pad, min(tm, max(128, n_pad // 2)), 128)  # >=2 row tiles
    tk = _pick_tile(n_pad, tk, 128)

    if support_resident is None:
        resident_vmem = (
            2 * n_pad * f_out_pad * 2     # whole support (bf16), 2 bufs worst-case
            + 2 * tm * tk * 4             # adj tiles (f32, double-buffered)
            + 2 * tm * f_out_pad * itemsize
            + tm * f_out_pad * 4          # f32 accumulator
        )
        support_resident = resident_vmem <= vmem_budget

    if support_resident:
        s_spec = pl.BlockSpec((n_pad, f_out_pad), lambda i, k: (0, 0))
        s_bytes = n_pad * f_out_pad * 2
    else:
        s_spec = pl.BlockSpec((tk, f_out_pad), lambda i, k: (k, 0))
        s_bytes = (n_pad // tm) * n_pad * f_out_pad * 2   # re-read per row tile

    out = pl.pallas_call(
        functools.partial(_aggregate_kernel, tk=tk, resident=support_resident),
        out_shape=jax.ShapeDtypeStruct((n_pad, f_out_pad), out_dtype),
        grid=(n_pad // tm, n_pad // tk),
        in_specs=[
            pl.BlockSpec((tm, tk), lambda i, k: (i, k)),   # adj tile (f32 in HBM)
            s_spec,                                        # support (bf16)
        ],
        out_specs=pl.BlockSpec((tm, f_out_pad), lambda i, k: (i, 0)),
        scratch_shapes=[pltpu.VMEM((tm, f_out_pad), jnp.float32)],
        compiler_params=pltpu.CompilerParams(
            dimension_semantics=("parallel", "arbitrary"),
            vmem_limit_bytes=vmem_budget,
        ),
        cost_estimate=pl.CostEstimate(
            flops=2 * n_pad * n_pad * f_out_pad,
            transcendentals=0,
            bytes_accessed=n_pad * n_pad * 4 + s_bytes
            + n_pad * f_out_pad * itemsize,
        ),
    )(adj, support)
    return out[:n, :f_out]


# ----------------------------------------------------------------------------
# References
# ----------------------------------------------------------------------------
def reference_gcn_f32(x, weight, adj):
    return adj @ (x @ weight)


def reference_gcn_bf16_matched(x, weight, adj):
    # Same numerics as the kernels: bf16 operands, f32 accumulation,
    # bf16-rounded intermediate `support`.
    xb = x.astype(jnp.bfloat16).astype(jnp.float32)
    wb = weight.astype(jnp.bfloat16).astype(jnp.float32)
    ab = adj.astype(jnp.bfloat16).astype(jnp.float32)
    support = (xb @ wb).astype(jnp.bfloat16).astype(jnp.float32)
    return ab @ support


# ----------------------------------------------------------------------------
# Main
# ----------------------------------------------------------------------------
if __name__ == "__main__":
    def make_case(key, n, f_in, f_out):
        k_x, k_adj, k_w, k_b = jax.random.split(key, 4)
        # Parameter init matching reset_parameters(): uniform(-stdv, stdv),
        # stdv = 1/sqrt(out_features).
        stdv = 1.0 / math.sqrt(f_out)
        weight = jax.random.uniform(k_w, (f_in, f_out), dtype=jnp.float32,
                                    minval=-stdv, maxval=stdv)
        # TODO(synk): bias is defined by the module but never applied in
        # forward(); created for parameter parity only.
        bias = jax.random.uniform(k_b, (f_out,), dtype=jnp.float32,
                                  minval=-stdv, maxval=stdv)
        x = jax.random.normal(k_x, (n, f_in), dtype=jnp.float32)
        a = jax.random.uniform(k_adj, (n, n), dtype=jnp.float32)
        adj = (a + a.T) / (2.0 * n)      # dense, symmetric, deterministic
        return x, weight, bias, adj

    # --- case 1: demo size -> fused single-pallas_call path ------------------
    N, F_IN, F_OUT = 128, 64, 128
    x, weight, bias, adj = make_case(jax.random.PRNGKey(0), N, F_IN, F_OUT)
    out = jax.block_until_ready(gcn_forward(x, weight, adj))
    assert out.shape == (N, F_OUT)
    ref_bf16 = reference_gcn_bf16_matched(x, weight, adj)
    assert jnp.allclose(out, ref_bf16, atol=1e-3, rtol=1e-3), \
        "fused path: mismatch vs bf16-matched reference"
    ref_f32 = reference_gcn_f32(x, weight, adj)
    assert jnp.allclose(out, ref_f32, atol=5e-2, rtol=5e-2), \
        "fused path: mismatch vs f32 reference"

    # --- case 2: larger size -> two-pass path (support VMEM-resident) --------
    N2, F_IN2, F_OUT2 = 1024, 64, 128
    x2, w2, _, adj2 = make_case(jax.random.PRNGKey(1), N2, F_IN2, F_OUT2)
    out2 = jax.block_until_ready(gcn_forward(x2, w2, adj2))
    assert out2.shape == (N2, F_OUT2)
    ref2 = reference_gcn_bf16_matched(x2, w2, adj2)
    assert jnp.allclose(out2, ref2, atol=2e-3, rtol=1e-2), \
        "two-pass (resident) path: mismatch vs bf16-matched reference"

    # --- case 3: same size, forced streaming-support (non-resident) path -----
    out3 = jax.block_until_ready(
        gcn_forward(x2, w2, adj2, support_resident=False, tk=256))
    assert jnp.allclose(out3, ref2, atol=2e-3, rtol=1e-2), \
        "two-pass (streaming) path: mismatch vs bf16-matched reference"

    print("KERNEL_OK")
</pallas_src>

<mosaic_0001>
module attributes {stable_mosaic.version = 11 : i64} {
  func.func @_fused_kernel(%arg0: i32, %arg1: memref<128x128xf32, #tpu.memory_space<vmem>>, %arg2: memref<128x128xf32, #tpu.memory_space<vmem>>, %arg3: memref<64x128xf32, #tpu.memory_space<vmem>>, %arg4: memref<64x128xf32, #tpu.memory_space<vmem>>) attributes {dimension_semantics = [#tpu.dimension_semantics<parallel>], iteration_bounds = array<i64: 2>, scalar_prefetch = 0 : i64, scratch_operands = 0 : i64, tpu.core_type = #tpu.core_type<tc>, window_params = [{pipeline_mode = #tpu.pipeline_mode<synchronous>, transform_indices = @transform_0, window_bounds = array<i64: 128, 128>}, {pipeline_mode = #tpu.pipeline_mode<synchronous>, transform_indices = @transform_1, window_bounds = array<i64: 128, 128>}, {transform_indices = @transform_2, window_bounds = array<i64: 64, 128>}, {transform_indices = @transform_3, window_bounds = array<i64: 64, 128>}]} {
    %c0 = arith.constant 0 : index
    %c0_0 = arith.constant 0 : index
    %0 = vector.load %arg1[%c0, %c0_0] : memref<128x128xf32, #tpu.memory_space<vmem>>, vector<128x128xf32>
    %1 = arith.truncf %0 : vector<128x128xf32> to vector<128x128xbf16>
    %c0_1 = arith.constant 0 : index
    %c0_2 = arith.constant 0 : index
    %2 = vector.load %arg2[%c0_1, %c0_2] : memref<128x128xf32, #tpu.memory_space<vmem>>, vector<128x128xf32>
    %3 = arith.truncf %2 : vector<128x128xf32> to vector<128x128xbf16>
    %cst = arith.constant dense<0.000000e+00> : vector<128x128xf32>
    %4 = tpu.matmul %1, %3, %cst {dimension_numbers = #tpu.dot_dimension_numbers<[1], [0], [0], [1], [0, 0, 1, 1], [], []>} : vector<128x128xbf16>, vector<128x128xbf16>, vector<128x128xf32> -> vector<128x128xf32>
    %5 = arith.truncf %4 : vector<128x128xf32> to vector<128x128xbf16>
    %c0_3 = arith.constant 0 : index
    %c0_4 = arith.constant 0 : index
    %6 = vector.load %arg3[%c0_3, %c0_4] : memref<64x128xf32, #tpu.memory_space<vmem>>, vector<64x128xf32>
    %7 = arith.truncf %6 : vector<64x128xf32> to vector<64x128xbf16>
    %cst_5 = arith.constant dense<0.000000e+00> : vector<64x128xf32>
    %8 = tpu.matmul %7, %5, %cst_5 {dimension_numbers = #tpu.dot_dimension_numbers<[1], [0], [0], [1], [0, 0, 1, 1], [], []>} : vector<64x128xbf16>, vector<128x128xbf16>, vector<64x128xf32> -> vector<64x128xf32>
    %c0_6 = arith.constant 0 : index
    %c0_7 = arith.constant 0 : index
    %9 = vector.load %arg4[%c0_6, %c0_7] : memref<64x128xf32, #tpu.memory_space<vmem>>, vector<64x128xf32>
    tpu.vector_store %arg4[%c0_6, %c0_7], %8 {strides = array<i32>} : memref<64x128xf32, #tpu.memory_space<vmem>>, vector<64x128xf32>,
    return
  }
  func.func @transform_0(%arg0: i32) -> (i32, i32) {
    %c0_i32 = arith.constant 0 : i32
    %c0_i32_0 = arith.constant 0 : i32
    %c0_i32_1 = arith.constant 0 : i32
    return %c0_i32, %c0_i32_0 : i32, i32
  }
  func.func @transform_1(%arg0: i32) -> (i32, i32) {
    %c0_i32 = arith.constant 0 : i32
    %c0_i32_0 = arith.constant 0 : i32
    %c0_i32_1 = arith.constant 0 : i32
    return %c0_i32, %c0_i32_0 : i32, i32
  }
  func.func @transform_2(%arg0: i32) -> (i32, i32) {
    %c0_i32 = arith.constant 0 : i32
    %c0_i32_0 = arith.constant 0 : i32
    return %arg0, %c0_i32 : i32, i32
  }
  func.func @transform_3(%arg0: i32) -> (i32, i32) {
    %c0_i32 = arith.constant 0 : i32
    %c0_i32_0 = arith.constant 0 : i32
    return %arg0, %c0_i32 : i32, i32
  }
}

</mosaic_0001>

<bundles_post_ra>
// kernel: tpu_custom_call.1
= control target key start
LH: loop header
LB: loop body
LE: loop exit
PB: predicated region body
PF: predicated region fallthrough
CT: control target
= control target key end

     0   :  { %8 = vsyncpa [#allocation3], 0  ;;  %s962_s0 = inlined_call_operand.hbm [shape: f32[128,128], index: 0, kind: input, shape index: {}]   ;;  %s963_s1 = inlined_call_operand.hbm [shape: f32[128,128], index: 1, kind: input, shape index: {}]   ;;  %s964_s2 = inlined_call_operand.hbm [shape: f32[128,128], index: 2, kind: input, shape index: {}]   ;;  %s965_s3 = inlined_call_operand.hbm [shape: f32[128,128], index: 3, kind: output, shape index: {}]  }
   0x1   :  { %9 = vsyncpa [#allocation6], 0 }
   0x2   :  { %10 = vsyncpa [#allocation4], 0 }
   0x3   :  { %12 = vsyncpa [#allocation4 + $0x1], 0  ;;  %s793_s12 = smov 0   ;;  %s795_s13 = smov 0  }
   0x4   :  { %s797_s14 = smov 0   ;;  %s799_s15 = smov 0  }
   0x5 LB: > { %s814_s16 = sadd.s32 4294967295, %s765_s15   ;;  %s486_s17 = sadd.s32 4294967294, %s765_s15   ;;  %s765_s15 = sphi %s799_s15, %s975_s15   ;;  %s761_s14 = sphi %s797_s14, %s974_s14   ;;  %s757_s13 = sphi %s795_s13, %s973_s13   ;;  %s753_s12 = sphi %s793_s12, %s972_s12  }
   0x6   : > { %p80_p0 = scmp.ne.s32.totalorder %s757_s13, %s753_s12  ;;  %p81_p1 = scmp.eq.s32.totalorder %s814_s16, 0 }
   0x7   : > { %p104_p2 = scmp.eq.s32.totalorder %s814_s16, 1  ;;  %p110_p3 = scmp.eq.s32.totalorder %s486_s17, 1 }
   0x8   : > { %p823_p4 = por %p81_p1, %p80_p0  ;;  %p487_p5 = scmp.ge.s32.totalorder %s765_s15, 1 }
   0x9   : > { %p828_p6 = por %p110_p3, %p80_p0  ;;  %p117_p7 = scmp.lt.s32.totalorder %s765_s15, 3 }
   0xa   : > { %s128_s22 = sshll.u32 %s962_s0, 4  ;;  %s767_s24 = smov [#allocation2]   ;;  %s129_s22 = int_to_ptr.hbm [resolvable:$true] %s128_s22 }
   0xb   : > { %p836_p8 = pnand %p487_p5, %p117_p7  ;;  %s130_s25 = sshll.u32 %s767_s24, 4  ;;  %s131_s25 = int_to_ptr.vmem [resolvable:$true] %s130_s25 }
   0xc   : > { %s142_s28 = sshll.u32 %s963_s1, 4  ;;  %s768_s29 = smov 128   ;;  %s143_s28 = int_to_ptr.hbm [resolvable:$true] %s142_s28 }
   0xd   : > { %p542_p9 = pneg %p836_p8  ;;  %s769_s30 = smov 8  }
   0xe   : > { %s770_s4 = smov [#allocation5]   ;;  %s855_s6 = sadd.s32 1, %s765_s15  }
   0xf   : > { %p543_p10 = pnand %p542_p9, %p81_p1  ;;  %s144_s5 = sshll.u32 %s770_s4, 4  ;;  %s145_s5 = int_to_ptr.vmem [resolvable:$true] %s144_s5 }
  0x10   : > { %s67_s7 = sadd.s32 1, %s761_s14  ;;  %s64_s8 = ssub.s32 %s765_s15, %s855_s6 }
  0x11   : > { %545 = dma.hbm_to_vmem [thread:$0]  (!%p543_p10), %s129_s22, 2048, %s131_s25, [#allocation3], %s768_s29, %s768_s29, %s769_s30  }
  0x12   : > { %548 = dma.hbm_to_vmem [thread:$0]  (!%p543_p10), %s143_s28, 2048, %s145_s5, [#allocation6], %s768_s29, %s768_s29, %s769_s30  }
  0x13   : > { %p74_p12 = scmp.ne.s32.totalorder %s761_s14, %s757_s13  ;;  %p65_p13 = scmp.eq.s32.totalorder %s64_s8, 0 }
  0x14   : > { %p75_p0 = scmp.eq.s32.totalorder %s765_s15, 0  ;;  %p559_p7 = scmp.lt.s32.totalorder %s765_s15, 2 }
  0x15   : > { %p865_p3 = por %p104_p2, %p74_p12  ;;  %s158_s11 = sand.u32 1, %s765_s15  }
  0x16   : > { %s870_s10 = scalar_select %p65_p13, %s761_s14, %s67_s7  }
  0x17   : > { %p76_p5 = por %p75_p0, %p74_p12  ;;  %s160_s17 = sand.u32 1, %s761_s14  }
  0x18   : > { %s491_s20 = sshll.u32 %s160_s17, 6  ;;  %s504_s21 = sshll.u32 %s765_s15, 6 }
  0x19   : > { %s167_s25 = scalar_lea.hbm %s964_s2, %s504_s21  ;;  %s162_s27 = scalar_lea.vmem [#allocation7], %s491_s20 }
  0x1a   : > { %s168_s26 = sshll.u32 %s167_s25, 4  ;;  %s170_s28 = sshll.u32 %s162_s27, 4  ;;  %s169_s26 = int_to_ptr.hbm [resolvable:$true] %s168_s26  ;;  %s171_s28 = int_to_ptr.vmem [resolvable:$true] %s170_s28 }
  0x1b   : > { %p879_p2 = pnand %p559_p7, %p76_p5  ;;  %s159_s5 = scalar_lea.sflag [#allocation3], %s158_s11 }
  0x1c   : > { %s661_s7 = sshra.s32 %s169_s26, 4  ;;  %s668_s20 = scalar_lea.hbm %s964_s2, 128  ;;  %s662_s7 = int_to_ptr.hbm [resolvable:$true] %s661_s7 }
  0x1d   : > { %s663_s8 = scalar_lea.hbm %s662_s7, 64  ;;  %p665_p10 = pneg %p879_p2 }
  0x1e   : > { %p664_p9 = scmp.ne.s32.totalorder %s662_s7, %s663_s8  ;;  %p669_p0 = scmp.lt.s32.totalorder %s662_s7, %s964_s2 }
  0x1f   : > { %p670_p5 = scmp.lt.s32.totalorder %s668_s20, %s663_s8 }
  0x20   : > { %p666_p12 = pnand %p665_p10, %p664_p9 }
  0x21   : > { %p671_p7 = por %p670_p5, %p669_p0 }
  0x22   : > { %p667_p13 = pneg %p666_p12 }
  0x24   : > { %p672_p11 = pnand %p671_p7, %p667_p13 }
  0x26   : > { %675 = shalt.err (!%p672_p11)
}
  0x27   : > { %552 = dma.hbm_to_vmem [thread:$0]  (!%p879_p2), %s169_s26, 1024, %s171_s28, %s159_s5, %s768_s29, %s768_s29, %s769_s30  }
  0x28   : > { %182 = sbr.rel (%p836_p8) target bundleno = 453 (0x1c5), region = 32 }
  0x2d   : > { %736 = dma.done.wait (%p81_p1), [#allocation3], 2048  }
  0x2e   : > { %738 = vsyncadd (%p81_p1), [#allocation3], 4294965248 }
  0x2f   : > { %740 = dma.done.wait (%p81_p1), [#allocation6], 2048  }
  0x30   : > { %742 = vsyncadd (%p81_p1), [#allocation6], 4294965248  ;;  %s194_s29 = sand.u32 1, %s814_s16   ;;  %s196_s30 = sand.u32 1, %s757_s13  }
  0x31   : > { %s910_s23 = sshll.u32 %s196_s30, 6  ;;  %s195_s11 = scalar_lea.sflag [#allocation3], %s194_s29 }
  0x32   : > { %s913_s25 = scalar_lea.vmem [#allocation7], %s910_s23 }
  0x33   : > { %744 = dma.done.wait (%p823_p4), %s195_s11, 1024  }
  0x34   : > { %746 = vsyncadd (%p823_p4), %s195_s11, 4294966272  ;;  %v262_v0 = vld [vmem:[#allocation5 + $0x70] sm:$0xff]  ;;  %v263_v1 = vld [vmem:[#allocation5 + $0x78] sm:$0xff]  ;;  %s221_s18 = scalar_lea.vmem [#allocation8], %s910_s23  ;;  %s505_s26 = sshll.u32 %s814_s16, 6 }
  0x35   : > { %v260_v2 = vld [vmem:[#allocation5 + $0x60] sm:$0xff]  ;;  %v271_v3 = vpack.c.bf16 %v263_v1, %v262_v0  ;;  %v261_v4 = vld [vmem:[#allocation5 + $0x68] sm:$0xff]  ;;  %v258_v6 = vld [vmem:[#allocation5 + $0x50] sm:$0xff]  ;;  %s390_s4 = scalar_lea.hbm %s965_s3, %s505_s26  ;;  %s391_s5 = sshll.u32 %s221_s18, 4  ;;  %s392_s5 = int_to_ptr.vmem [resolvable:$true] %s391_s5 }
  0x36   : > { %v270_v5 = vpack.c.bf16 %v261_v4, %v260_v2  ;;  %v259_v7 = vld [vmem:[#allocation5 + $0x58] sm:$0xff]  ;;  %v256_v9 = vld [vmem:[#allocation5 + $0x40] sm:$0xff]  ;;  %v257_v10 = vld [vmem:[#allocation5 + $0x48] sm:$0xff]  ;;  %s393_s7 = sshll.u32 %s390_s4, 4  ;;  %s379_s8 = scalar_lea.sflag [#allocation4], %s196_s30  ;;  %s394_s7 = int_to_ptr.hbm [resolvable:$true] %s393_s7 }
  0x37   : > { %506 = vmatpush.bf16.msra.mxu2 %v271_v3  ;;  %507 = vmatpush.bf16.msra.mxu3 %v271_v3  ;;  %v269_v8 = vpack.c.bf16 %v259_v7, %v258_v6  ;;  %v268_v11 = vpack.c.bf16 %v257_v10, %v256_v9  ;;  %v254_v12 = vld [vmem:[#allocation5 + $0x30] sm:$0xff]  ;;  %v255_v13 = vld [vmem:[#allocation5 + $0x38] sm:$0xff]  ;;  %v252_v15 = vld [vmem:[#allocation5 + $0x20] sm:$0xff]  ;;  %s705_s17 = sshra.s32 %s394_s7, 4  ;;  %s711_s22 = scalar_lea.hbm %s965_s3, 128  ;;  %s706_s17 = int_to_ptr.hbm [resolvable:$true] %s705_s17 }
  0x38   : > { %272 = vmatpush.bf16.msra.mxu0 %v271_v3  ;;  %v267_v14 = vpack.c.bf16 %v255_v13, %v254_v12  ;;  %v253_v16 = vld [vmem:[#allocation5 + $0x28] sm:$0xff]  ;;  %v250_v18 = vld [vmem:[#allocation5 + $0x10] sm:$0xff]  ;;  %v251_v19 = vld [vmem:[#allocation5 + $0x18] sm:$0xff]  ;;  %s707_s21 = scalar_lea.hbm %s706_s17, 64  ;;  %p712_p11 = scmp.lt.s32.totalorder %s706_s17, %s965_s3 }
  0x39   : > { %v266_v17 = vpack.c.bf16 %v253_v16, %v252_v15  ;;  %v265_v20 = vpack.c.bf16 %v251_v19, %v250_v18  ;;  %v248_v21 = vld [vmem:[#allocation5] sm:$0xff]  ;;  %v249_v22 = vld [vmem:[#allocation5 + $0x8] sm:$0xff]  ;;  %v230_v23 = vld [vmem:[#allocation2 + $0x30] sm:$0xff]  ;;  %p708_p1 = scmp.ne.s32.totalorder %s706_s17, %s707_s21  ;;  %p713_p2 = scmp.lt.s32.totalorder %s711_s22, %s707_s21 }
  0x3a   : > { %v264_v24 = vpack.c.bf16 %v249_v22, %v248_v21  ;;  %v231_v25 = vld [vmem:[#allocation2 + $0x38] sm:$0xff]  ;;  %v236_v26 = vld [vmem:[#allocation2 + $0x60] sm:$0xff]  ;;  %v237_v27 = vld [vmem:[#allocation2 + $0x68] sm:$0xff] }
  0x3b   : > { %508 = vmatpush.bf16.msra.mxu2 %v270_v5  ;;  %509 = vmatpush.bf16.msra.mxu3 %v270_v5  ;;  %v224_v28 = vld [vmem:[#allocation2] sm:$0xff]  ;;  %v225_v29 = vld [vmem:[#allocation2 + $0x8] sm:$0xff]  ;;  %v243_v30 = vpack.c.bf16 %v231_v25, %v230_v23  ;;  %v246_v31 = vpack.c.bf16 %v237_v27, %v236_v26  ;;  %v238_v35 = vld [vmem:[#allocation2 + $0x70] sm:$0xff]  ;;  %p709_p4 = pnand %p708_p1, %p865_p3  ;;  %p714_p9 = por %p713_p2, %p712_p11 }
  0x3c   : > { %273 = vmatpush.bf16.msra.mxu0 %v270_v5  ;;  %v240_v32 = vpack.c.bf16 %v225_v29, %v224_v28  ;;  %v232_v33 = vld [vmem:[#allocation2 + $0x40] sm:$0xff]  ;;  %v233_v34 = vld [vmem:[#allocation2 + $0x48] sm:$0xff]  ;;  %v239_v36 = vld [vmem:[#allocation2 + $0x78] sm:$0xff] }
  0x3d   : > { %v226_v37 = vld [vmem:[#allocation2 + $0x10] sm:$0xff]  ;;  %v227_v38 = vld [vmem:[#allocation2 + $0x18] sm:$0xff]  ;;  %v244_v39 = vpack.c.bf16 %v233_v34, %v232_v33  ;;  %v247_v40 = vpack.c.bf16 %v239_v36, %v238_v35  ;;  %v228_v44 = vld [vmem:[#allocation2 + $0x20] sm:$0xff]  ;;  %p710_p8 = pneg %p709_p4 }
  0x3e   : > { %v241_v41 = vpack.c.bf16 %v227_v38, %v226_v37  ;;  %v234_v42 = vld [vmem:[#allocation2 + $0x50] sm:$0xff]  ;;  %v235_v43 = vld [vmem:[#allocation2 + $0x58] sm:$0xff]  ;;  %v229_v45 = vld [vmem:[#allocation2 + $0x28] sm:$0xff] }
  0x3f   : > { %510 = vmatpush.bf16.msra.mxu2 %v269_v8  ;;  %511 = vmatpush.bf16.msra.mxu3 %v269_v8  ;;  %v245_v46 = vpack.c.bf16 %v235_v43, %v234_v42  ;;  %v242_v47 = vpack.c.bf16 %v229_v45, %v228_v44  ;;  %v329_v7 = vld [vmem:[%s913_s25] sm:$0xff]  ;;  %v335_v9 = vld [vmem:[%s913_s25 + $0x30] sm:$0xff]  ;;  %v336_v10 = vld [vmem:[%s913_s25 + $0x38] sm:$0xff]  ;;  %p715_p10 = pnand %p714_p9, %p710_p8 }
  0x40   : > { %274 = vmatpush.bf16.msra.mxu0 %v269_v8  ;;  %v330_v8 = vld [vmem:[%s913_s25 + $0x8] sm:$0xff]  ;;  %v340_v13 = vpack.c.bf16 %v336_v10, %v335_v9  ;;  %v332_v15 = vld [vmem:[%s913_s25 + $0x18] sm:$0xff] }
  0x41   : > { %v337_v12 = vpack.c.bf16 %v330_v8, %v329_v7  ;;  %v334_v18 = vld [vmem:[%s913_s25 + $0x28] sm:$0xff] }
  0x43   : > { %512 = vmatpush.bf16.msra.mxu2 %v268_v11  ;;  %513 = vmatpush.bf16.msra.mxu3 %v268_v11 }
  0x44   : > { %275 = vmatpush.bf16.msra.mxu0 %v268_v11 }
  0x47   : > { %514 = vmatpush.bf16.msra.mxu2 %v267_v14  ;;  %515 = vmatpush.bf16.msra.mxu3 %v267_v14 }
  0x48   : > { %276 = vmatpush.bf16.msra.mxu0 %v267_v14  ;;  %v331_v14 = vld [vmem:[%s913_s25 + $0x10] sm:$0xff] }
  0x49   : > { %v338_v16 = vpack.c.bf16 %v332_v15, %v331_v14 }
  0x4b   : > { %516 = vmatpush.bf16.msra.mxu2 %v266_v17  ;;  %517 = vmatpush.bf16.msra.mxu3 %v266_v17 }
  0x4c   : > { %277 = vmatpush.bf16.msra.mxu0 %v266_v17  ;;  %v333_v17 = vld [vmem:[%s913_s25 + $0x20] sm:$0xff] }
  0x4d   : > { %v339_v19 = vpack.c.bf16 %v334_v18, %v333_v17 }
  0x4f   : > { %518 = vmatpush.bf16.msra.mxu2 %v265_v20  ;;  %519 = vmatpush.bf16.msra.mxu3 %v265_v20 }
  0x50   : > { %278 = vmatpush.bf16.msra.mxu0 %v265_v20 }
  0x53   : > { %520 = vmatpush.bf16.msra.mxu2 %v264_v24  ;;  %521 = vmatpush.bf16.msra.mxu3 %v264_v24 }
  0x54   : > { %279 = vmatpush.bf16.msra.mxu0 %v264_v24 }
  0x56   : > { %295 = vmatmul.bf16.vlgmr.msra.gmra.mxu2 %v243_v30  ;;  %310 = vmatmul.bf16.vlgmr.msra.gmra.mxu3 %v246_v31 }
  0x57   : > { %280 = vmatmul.bf16.vlgmr.msra.gmra.mxu0 %v240_v32 }
  0x66   : > { %300 = vmatmul.bf16.gmra.mxu2 %v244_v39  ;;  %315 = vmatmul.bf16.gmra.mxu3 %v247_v40 }
  0x67   : > { %285 = vmatmul.bf16.gmra.mxu0 %v241_v41 }
  0x76   : > { %305 = vmatmul.bf16.gmra.mxu2 %v245_v46 }
  0x77   : > { %290 = vmatmul.bf16.gmra.mxu0 %v242_v47 }
  0xd4   : > { %v281_v48 = vpop.f32.mrf.mxu0 }
  0xd9   : > { %v296_v49 = vpop.f32.mrf.mxu2  ;;  %v311_v50 = vpop.f32.mrf.mxu3 }
  0xdc   : > { %v283_v53 = vpop.f32.mrf.mxu0 }
  0xdd   : > { %v321_v11 = vpack.c.bf16 %v283_v53, %v281_v48 }
  0xe1   : > { %v298_v51 = vpop.f32.mrf.mxu2  ;;  %v313_v52 = vpop.f32.mrf.mxu3 }
  0xe2   : > { %v327_v60 = vpack.c.bf16 %v313_v52, %v311_v50  ;;  %v324_v3 = vpack.c.bf16 %v298_v51, %v296_v49 }
  0xe4   : > { %v286_v56 = vpop.f32.mrf.mxu0 }
  0xe9   : > { %v301_v54 = vpop.f32.mrf.mxu2  ;;  %v316_v55 = vpop.f32.mrf.mxu3 }
  0xec   : > { %v288_v61 = vpop.f32.mrf.mxu0 }
  0xed   : > { %v322_v6 = vpack.c.bf16 %v288_v61, %v286_v56 }
  0xf1   : > { %v303_v57 = vpop.f32.mrf.mxu2  ;;  %v318_v58 = vpop.f32.mrf.mxu3 }
  0xf2   : > { %v328_v59 = vpack.c.bf16 %v318_v58, %v316_v55  ;;  %v325_v2 = vpack.c.bf16 %v303_v57, %v301_v54 }
  0xf4   : > { %341 = vmatpush.bf16.msra.mxu1 %v328_v59  ;;  %522 = vmatpush.bf16.msrb.mxu3 %v328_v59  ;;  %v291_v63 = vpop.f32.mrf.mxu0 }
  0xf8   : > { %342 = vmatpush.bf16.msra.mxu1 %v327_v60  ;;  %523 = vmatpush.bf16.msrb.mxu3 %v327_v60 }
  0xf9   : > { %v306_v62 = vpop.f32.mrf.mxu2 }
  0xfc   : > { %v293_v4 = vpop.f32.mrf.mxu0 }
  0xfd   : > { %v323_v5 = vpack.c.bf16 %v293_v4, %v291_v63 }
 0x101   : > { %v308_v0 = vpop.f32.mrf.mxu2 }
 0x102   : > { %v326_v1 = vpack.c.bf16 %v308_v0, %v306_v62 }
 0x104   : > { %343 = vmatpush.bf16.msra.mxu1 %v326_v1  ;;  %524 = vmatpush.bf16.msrb.mxu3 %v326_v1 }
 0x108   : > { %344 = vmatpush.bf16.msra.mxu1 %v325_v2  ;;  %525 = vmatpush.bf16.msrb.mxu3 %v325_v2 }
 0x10c   : > { %345 = vmatpush.bf16.msra.mxu1 %v324_v3  ;;  %526 = vmatpush.bf16.msrb.mxu3 %v324_v3 }
 0x110   : > { %346 = vmatpush.bf16.msra.mxu1 %v323_v5  ;;  %527 = vmatpush.bf16.msrb.mxu3 %v323_v5 }
 0x114   : > { %347 = vmatpush.bf16.msra.mxu1 %v322_v6  ;;  %528 = vmatpush.bf16.msrb.mxu3 %v322_v6 }
 0x118   : > { %348 = vmatpush.bf16.msra.mxu1 %v321_v11  ;;  %529 = vmatpush.bf16.msrb.mxu3 %v321_v11 }
 0x11b   : > { %349 = vmatmul.bf16.vlgmr.msra.gmra.mxu1 %v337_v12  ;;  %364 = vmatmul.bf16.vlgmr.msrb.gmra.mxu3 %v340_v13 }
 0x12b   : > { %354 = vmatmul.bf16.gmra.mxu1 %v338_v16 }
 0x13b   : > { %359 = vmatmul.bf16.gmra.mxu1 %v339_v19 }
 0x198   : > { %v350_v20 = vpop.f32.mrf.mxu1 }
 0x199   : > { %370 = vst [vmem:[%s221_s18] sm:$0xff] %v350_v20 }
 0x19e   : > { %v365_v21 = vpop.f32.mrf.mxu3 }
 0x19f   : > { %376 = vst [vmem:[%s221_s18 + $0x30] sm:$0xff] %v365_v21 }
 0x1a0   : > { %v352_v22 = vpop.f32.mrf.mxu1 }
 0x1a1   : > { %371 = vst [vmem:[%s221_s18 + $0x8] sm:$0xff] %v352_v22 }
 0x1a6   : > { %v367_v23 = vpop.f32.mrf.mxu3 }
 0x1a7   : > { %377 = vst [vmem:[%s221_s18 + $0x38] sm:$0xff] %v367_v23 }
 0x1a8   : > { %v355_v24 = vpop.f32.mrf.mxu1 }
 0x1a9   : > { %372 = vst [vmem:[%s221_s18 + $0x10] sm:$0xff] %v355_v24 }
 0x1b0   : > { %v357_v25 = vpop.f32.mrf.mxu1 }
 0x1b1   : > { %373 = vst [vmem:[%s221_s18 + $0x18] sm:$0xff] %v357_v25 }
 0x1b8   : > { %v360_v26 = vpop.f32.mrf.mxu1 }
 0x1b9   : > { %374 = vst [vmem:[%s221_s18 + $0x20] sm:$0xff] %v360_v26 }
 0x1c0   : > { %v362_v27 = vpop.f32.mrf.mxu1 }
 0x1c1   : > { %375 = vst [vmem:[%s221_s18 + $0x28] sm:$0xff] %v362_v27 }
 0x1c2   : > { %718 = shalt.err (!%p715_p10)
}
 0x1c3   : > { %s771_s30 = smov 128   ;;  %s772_s23 = smov 8  }
 0x1c4   : > { %540 = dma.vmem_to_hbm [thread:$0]  (%p865_p3), %s392_s5, 1024, %s394_s7, %s379_s8, %s771_s30, %s771_s30, %s772_s23  }
 0x1c5 PF: > { %s408_s11 = sand.u32 1, %s753_s12   ;;  %p971_p12 = scmp.ge.s32.totalorder %s765_s15, 2 }
 0x1c6   : > { %s409_s25 = scalar_lea.sflag [#allocation4], %s408_s11 }
 0x1c7   : > { %p554_p13 = pnand %p971_p12, %p828_p6 }
 0x1c9   : > { %p555_p0 = pneg %p554_p13 }
 0x1cb   : > { %748 = dma.done.wait (%p555_p0), %s409_s25, 1024  }
 0x1cc   : > { %750 = vsyncadd (%p555_p0), %s409_s25, 4294966272  ;;  %p15_p5 = scmp.ge.s32.totalorder %s855_s6, 4   ;;  %s972_s12 = smov %s757_s13 }
 0x1cd   : > { %s973_s13 = smov %s761_s14  ;;  %s974_s14 = smov %s870_s10 }
 0x1ce   : > { %s975_s15 = smov %s855_s6  ;;  %17 = sbr.rel (!%p15_p5) target bundleno = 5 (0x5), region = 84 }
 0x1d3   :  { %415 = vsyncpa [#allocation3], 1 }
 0x1d4   :  { %417 = vsyncpa [#allocation3 + $0x1], 1 }
 0x1d5   :  { %418 = vsyncpa [#allocation6], 1 }
 0x1d6   :  { %419 = vsyncpa [#allocation4], 1 }
 0x1d7   :  { %421 = vsyncpa [#allocation4 + $0x1], 1 }

</bundles_post_ra>
